<compile_context>
chip_gen: v5e
topology: v5e:2x2
jax: 0.10.0
libtpu: 0.0.40
codegen_flags: <defaults>
</compile_context>

<pallas_src>
import jax
import jax.numpy as jnp
from jax import lax
from jax.experimental import pallas as pl
from jax.experimental.pallas import tpu as pltpu

BN_EPS = 1e-5
LANE = 128


def _pad_axis(a, axis, multiple):
    """Zero-pad `axis` of `a` up to the next multiple of `multiple`."""
    size = a.shape[axis]
    pad = (-size) % multiple
    if pad == 0:
        return a
    widths = [(0, 0)] * a.ndim
    widths[axis] = (0, pad)
    return jnp.pad(a, widths)


def _norm_mlp_kernel(x_ref, w1_ref, b1_ref, w2_ref, scales_ref, shifts_ref,
                     w3_ref, o_ref):
    """fc1+ReLU -> fc2 -> BN(batch stats) -> *scales+shifts -> ReLU -> fc3.

    Used both grid-less (refs are whole arrays) and under a leading "stack"
    grid axis (leading dim squeezed by the BlockSpecs, so refs look the same).
    Matmul operands are bf16 (weights stored bf16, activations cast at the
    dot); accumulation and BN math are f32.
    """
    wdt = w1_ref.dtype

    # ---- fc1 + ReLU --------------------------------------------------------
    x = x_ref[...]
    z1 = jnp.dot(x.astype(wdt), w1_ref[...],
                 preferred_element_type=jnp.float32) + b1_ref[...]
    x1 = jnp.maximum(z1, 0.0)                                    # (B, H1p) f32

    # ---- fc2 (bias dropped: exactly cancelled by the batch-mean below) -----
    z2 = jnp.dot(x1.astype(wdt), w2_ref[...],
                 preferred_element_type=jnp.float32)             # (B, H2p) f32

    # ---- BatchNorm1d (affine=False, batch stats) fused with learned affine --
    mean = jnp.mean(z2, axis=0, keepdims=True)                   # (1, H2p)
    centered = z2 - mean
    var = jnp.mean(centered * centered, axis=0, keepdims=True)   # biased var
    inv = lax.rsqrt(var + BN_EPS) * scales_ref[...]              # fused scale (EUP)
    x2 = jnp.maximum(centered * inv + shifts_ref[...], 0.0)      # (B, H2p) f32

    # ---- fc3 (no bias); lane dim padded to 128 -> unmasked lane-dense vst ---
    o_ref[...] = jnp.dot(x2.astype(wdt), w3_ref[...],
                         preferred_element_type=jnp.float32).astype(o_ref.dtype)


def prepare_padded_params(params, lane=LANE, weights_dtype=jnp.bfloat16):
    """One-time parameter prep (outside the per-call path).

    * zero-pads every hidden / output feature dim to the 128-lane width
      (exact: padded columns stay exactly zero through BN and fc3),
    * drops the fc2 bias (cancelled by the batch-mean subtraction),
    * stores the matmul weights in `weights_dtype` (bf16 by default) to halve
      the per-call weight bytes; the small row vectors stay f32.
    Returns (padded_params, num_actions).
    """
    w1, b1, w2, b2, scales, shifts, w3 = params
    del b2  # exactly cancelled by training-mode BatchNorm's mean subtraction
    num_actions = w3.shape[1]
    w1p = _pad_axis(w1, 1, lane).astype(weights_dtype)
    b1p = _pad_axis(b1, 1, lane)
    w2p = _pad_axis(_pad_axis(w2, 0, lane), 1, lane).astype(weights_dtype)
    scalesp = _pad_axis(scales, 1, lane)
    shiftsp = _pad_axis(shifts, 1, lane)
    w3p = _pad_axis(_pad_axis(w3, 0, lane), 1, lane).astype(weights_dtype)
    return (w1p, b1p, w2p, scalesp, shiftsp, w3p), num_actions


def _cost_estimate(n_stack, B, padded_params, x_itemsize=4):
    w1, b1, w2, scales, shifts, w3 = padded_params
    d_in, h1p = w1.shape
    h2p, ap = w3.shape
    flops = 2 * n_stack * B * (d_in * h1p + h1p * h2p + h2p * ap)
    transcendentals = n_stack * h2p                      # one rsqrt per feature
    param_bytes = sum(int(p.size) * p.dtype.itemsize for p in padded_params)
    bytes_accessed = (n_stack * B * d_in * x_itemsize + param_bytes
                      + n_stack * B * ap * 4)
    return pl.CostEstimate(flops=flops, transcendentals=transcendentals,
                           bytes_accessed=bytes_accessed)


def norm_neural_network_forward(x, padded_params, num_actions, *,
                                slice_output=False):
    """Single forward in one grid-less Pallas call (everything VMEM-resident).

    Returns the lane-dense padded (B, 128) slab by default (padded columns are
    exactly zero); pass slice_output=True only if the consumer needs the
    narrow (B, num_actions) view — the slice is a separate XLA copy op and a
    measurable fraction of this latency-bound ~1 us forward.
    """
    w1, b1, w2, scales, shifts, w3 = padded_params
    B = x.shape[0]
    ap = w3.shape[1]

    vmem = pl.BlockSpec(memory_space=pltpu.MemorySpace.VMEM)
    out_padded = pl.pallas_call(
        _norm_mlp_kernel,
        out_shape=jax.ShapeDtypeStruct((B, ap), jnp.float32),
        in_specs=[vmem] * 7,
        out_specs=vmem,
        cost_estimate=_cost_estimate(1, B, padded_params),
        # If B ever scales into the multi-MB activation regime, raise the
        # scoped VMEM limit explicitly (v5e default is only 16 MiB), e.g.:
        # compiler_params=pltpu.CompilerParams(vmem_limit_bytes=32*1024*1024),
    )(x, w1, b1, w2, scales, shifts, w3)

    if slice_output:
        return out_padded[:, :num_actions]
    return out_padded


def norm_neural_network_forward_stacked(x_stack, padded_params, num_actions, *,
                                        slice_output=False):
    """N independent forwards (BN stats per sub-batch) amortized in ONE call.

    grid=(N,) with the stack axis marked "parallel" (both TensorCores on v7x);
    weight BlockSpecs have a constant index_map, so the weights are DMA'd once
    and stay VMEM-resident across grid steps.
    """
    w1, b1, w2, scales, shifts, w3 = padded_params
    N, B, d_in = x_stack.shape
    ap = w3.shape[1]

    def replicated(arr):
        nd = arr.ndim
        return pl.BlockSpec(arr.shape, lambda n, _nd=nd: (0,) * _nd)

    grid_spec = pltpu.PrefetchScalarGridSpec(
        num_scalar_prefetch=0,
        grid=(N,),
        in_specs=[
            pl.BlockSpec((None, B, d_in), lambda n: (n, 0, 0)),   # per-step x
            replicated(w1), replicated(b1), replicated(w2),
            replicated(scales), replicated(shifts), replicated(w3),
        ],
        out_specs=pl.BlockSpec((None, B, ap), lambda n: (n, 0, 0)),
    )
    out_padded = pl.pallas_call(
        _norm_mlp_kernel,
        out_shape=jax.ShapeDtypeStruct((N, B, ap), jnp.float32),
        grid_spec=grid_spec,
        compiler_params=pltpu.CompilerParams(
            dimension_semantics=("parallel",)),
        cost_estimate=_cost_estimate(N, B, padded_params),
    )(x_stack, w1, b1, w2, scales, shifts, w3)

    if slice_output:
        return out_padded[..., :num_actions]
    return out_padded


def init_params(key, input_dims, h1_dims, h2_dims, num_actions):
    """Deterministic synthetic parameters matching the module's shapes.
    Linear weights are stored transposed: (in, out)."""
    ks = jax.random.split(key, 7)
    w1 = jax.random.normal(ks[0], (input_dims, h1_dims), jnp.float32) * 0.1
    b1 = jax.random.normal(ks[1], (1, h1_dims), jnp.float32) * 0.1
    w2 = jax.random.normal(ks[2], (h1_dims, h2_dims), jnp.float32) * 0.1
    b2 = jax.random.normal(ks[3], (1, h2_dims), jnp.float32) * 0.1
    scales = jax.random.normal(ks[4], (1, h2_dims), jnp.float32)
    shifts = jax.random.normal(ks[5], (1, h2_dims), jnp.float32)
    w3 = jax.random.normal(ks[6], (h2_dims, num_actions), jnp.float32) * 0.1
    return (w1, b1, w2, b2, scales, shifts, w3)


def _reference_forward_f32(x, params):
    """Exact module semantics (f32, includes the BN-cancelled fc2 bias)."""
    w1, b1, w2, b2, scales, shifts, w3 = params
    x1 = jnp.maximum(x @ w1 + b1, 0.0)
    z2 = x1 @ w2 + b2
    mean = jnp.mean(z2, axis=0, keepdims=True)
    var = jnp.mean((z2 - mean) ** 2, axis=0, keepdims=True)
    centered = (z2 - mean) / jnp.sqrt(var + BN_EPS)
    x2 = jnp.maximum(centered * scales + shifts, 0.0)
    return x2 @ w3


def _reference_forward_matched(x, params):
    """Pure-JAX reference with the SAME arithmetic as the kernel:
    bf16 dot operands / f32 accumulation, fc2 bias dropped, fused BN affine."""
    w1, b1, w2, b2, scales, shifts, w3 = params
    del b2
    bf = jnp.bfloat16
    z1 = jnp.dot(x.astype(bf), w1.astype(bf),
                 preferred_element_type=jnp.float32) + b1
    x1 = jnp.maximum(z1, 0.0)
    z2 = jnp.dot(x1.astype(bf), w2.astype(bf),
                 preferred_element_type=jnp.float32)
    mean = jnp.mean(z2, axis=0, keepdims=True)
    centered = z2 - mean
    var = jnp.mean(centered * centered, axis=0, keepdims=True)
    inv = lax.rsqrt(var + BN_EPS) * scales
    x2 = jnp.maximum(centered * inv + shifts, 0.0)
    return jnp.dot(x2.astype(bf), w3.astype(bf),
                   preferred_element_type=jnp.float32)


if __name__ == "__main__":
    # Small shapes consistent with the module's forward.
    B, input_dims, h1_dims, h2_dims, num_actions = 8, 16, 32, 32, 4

    key = jax.random.PRNGKey(0)
    k_x, k_p, k_s = jax.random.split(key, 3)
    x = jax.random.normal(k_x, (B, input_dims), jnp.float32)
    params = init_params(k_p, input_dims, h1_dims, h2_dims, num_actions)

    # One-time lane padding + bf16 weight storage (keeps per-call path lean).
    padded_params, na = prepare_padded_params(params)

    # ---- single-call forward (padded, lane-dense output slab) ---------------
    out_padded = norm_neural_network_forward(x, padded_params, na)
    out_padded = jax.block_until_ready(out_padded)
    assert out_padded.shape == (B, LANE)
    assert bool(jnp.all(out_padded[:, na:] == 0.0))   # padding is exact
    out = out_padded[:, :na]                          # narrow view only for checks

    # Tight check vs. a pure-JAX reference using the same arithmetic.
    ref_matched = _reference_forward_matched(x, params)
    assert out.shape == (B, num_actions)
    assert jnp.allclose(out, ref_matched, atol=1e-4, rtol=1e-4)

    # Loose sanity check vs. exact f32 module semantics (bf16 weight storage +
    # dropping the BN-cancelled fc2 bias only perturb at rounding level).
    ref_f32 = _reference_forward_f32(x, params)
    assert jnp.allclose(out, ref_f32, atol=1e-1, rtol=1e-1)

    # ---- stacked variant: N independent sub-batches in ONE pallas_call ------
    N = 4
    x_stack = jax.random.normal(k_s, (N, B, input_dims), jnp.float32)
    out_stack = norm_neural_network_forward_stacked(x_stack, padded_params, na)
    out_stack = jax.block_until_ready(out_stack)
    assert out_stack.shape == (N, B, LANE)
    ref_stack = jnp.stack(
        [_reference_forward_matched(x_stack[i], params) for i in range(N)])
    assert jnp.allclose(out_stack[..., :na], ref_stack, atol=1e-4, rtol=1e-4)

    print("KERNEL_OK")
</pallas_src>

<mosaic_0001>
module attributes {stable_mosaic.version = 11 : i64} {
  func.func @_norm_mlp_kernel(%arg0: memref<8x16xf32, #tpu.memory_space<vmem>>, %arg1: memref<16x128xbf16, #tpu.memory_space<vmem>>, %arg2: memref<1x128xf32, #tpu.memory_space<vmem>>, %arg3: memref<128x128xbf16, #tpu.memory_space<vmem>>, %arg4: memref<1x128xf32, #tpu.memory_space<vmem>>, %arg5: memref<1x128xf32, #tpu.memory_space<vmem>>, %arg6: memref<128x128xbf16, #tpu.memory_space<vmem>>, %arg7: memref<8x128xf32, #tpu.memory_space<vmem>>) attributes {dimension_semantics = [], scalar_prefetch = 0 : i64, scratch_operands = 0 : i64, tpu.core_type = #tpu.core_type<tc>} {
    %c0 = arith.constant 0 : index
    %c0_0 = arith.constant 0 : index
    %0 = vector.load %arg0[%c0, %c0_0] : memref<8x16xf32, #tpu.memory_space<vmem>>, vector<8x16xf32>
    %1 = arith.truncf %0 : vector<8x16xf32> to vector<8x16xbf16>
    %c0_1 = arith.constant 0 : index
    %c0_2 = arith.constant 0 : index
    %2 = vector.load %arg1[%c0_1, %c0_2] : memref<16x128xbf16, #tpu.memory_space<vmem>>, vector<16x128xbf16>
    %cst = arith.constant dense<0.000000e+00> : vector<8x128xf32>
    %3 = tpu.matmul %1, %2, %cst {dimension_numbers = #tpu.dot_dimension_numbers<[1], [0], [0], [1], [0, 0, 1, 1], [], []>} : vector<8x16xbf16>, vector<16x128xbf16>, vector<8x128xf32> -> vector<8x128xf32>
    %c0_3 = arith.constant 0 : index
    %c0_4 = arith.constant 0 : index
    %4 = vector.load %arg2[%c0_3, %c0_4] : memref<1x128xf32, #tpu.memory_space<vmem>>, vector<1x128xf32>
    %5 = vector.broadcast %4 : vector<1x128xf32> to vector<8x128xf32>
    %6 = arith.addf %3, %5 : vector<8x128xf32>
    %cst_5 = arith.constant 0.000000e+00 : f32
    %7 = vector.broadcast %cst_5 : f32 to vector<8x128xf32>
    %8 = arith.maximumf %6, %7 : vector<8x128xf32>
    %9 = arith.truncf %8 : vector<8x128xf32> to vector<8x128xbf16>
    %c0_6 = arith.constant 0 : index
    %c0_7 = arith.constant 0 : index
    %10 = vector.load %arg3[%c0_6, %c0_7] : memref<128x128xbf16, #tpu.memory_space<vmem>>, vector<128x128xbf16>
    %cst_8 = arith.constant dense<0.000000e+00> : vector<8x128xf32>
    %11 = tpu.matmul %9, %10, %cst_8 {dimension_numbers = #tpu.dot_dimension_numbers<[1], [0], [0], [1], [0, 0, 1, 1], [], []>} : vector<8x128xbf16>, vector<128x128xbf16>, vector<8x128xf32> -> vector<8x128xf32>
    %cst_9 = arith.constant dense<0.000000e+00> : vector<128xf32>
    %12 = vector.multi_reduction <add>, %11, %cst_9 [0] : vector<8x128xf32> to vector<128xf32>
    %13 = vector.shape_cast %12 : vector<128xf32> to vector<1x128xf32>
    %cst_10 = arith.constant 8.000000e+00 : f32
    %14 = vector.broadcast %cst_10 : f32 to vector<1x128xf32>
    %15 = arith.divf %13, %14 : vector<1x128xf32>
    %16 = vector.broadcast %15 : vector<1x128xf32> to vector<8x128xf32>
    %17 = arith.subf %11, %16 : vector<8x128xf32>
    %18 = arith.mulf %17, %17 : vector<8x128xf32>
    %cst_11 = arith.constant dense<0.000000e+00> : vector<128xf32>
    %19 = vector.multi_reduction <add>, %18, %cst_11 [0] : vector<8x128xf32> to vector<128xf32>
    %20 = vector.shape_cast %19 : vector<128xf32> to vector<1x128xf32>
    %cst_12 = arith.constant 8.000000e+00 : f32
    %21 = vector.broadcast %cst_12 : f32 to vector<1x128xf32>
    %22 = arith.divf %20, %21 : vector<1x128xf32>
    %cst_13 = arith.constant 9.99999974E-6 : f32
    %23 = vector.broadcast %cst_13 : f32 to vector<1x128xf32>
    %24 = arith.addf %22, %23 : vector<1x128xf32>
    %25 = math.rsqrt %24 : vector<1x128xf32>
    %c0_14 = arith.constant 0 : index
    %c0_15 = arith.constant 0 : index
    %26 = vector.load %arg4[%c0_14, %c0_15] : memref<1x128xf32, #tpu.memory_space<vmem>>, vector<1x128xf32>
    %27 = arith.mulf %25, %26 : vector<1x128xf32>
    %28 = vector.broadcast %27 : vector<1x128xf32> to vector<8x128xf32>
    %29 = arith.mulf %17, %28 : vector<8x128xf32>
    %c0_16 = arith.constant 0 : index
    %c0_17 = arith.constant 0 : index
    %30 = vector.load %arg5[%c0_16, %c0_17] : memref<1x128xf32, #tpu.memory_space<vmem>>, vector<1x128xf32>
    %31 = vector.broadcast %30 : vector<1x128xf32> to vector<8x128xf32>
    %32 = arith.addf %29, %31 : vector<8x128xf32>
    %cst_18 = arith.constant 0.000000e+00 : f32
    %33 = vector.broadcast %cst_18 : f32 to vector<8x128xf32>
    %34 = arith.maximumf %32, %33 : vector<8x128xf32>
    %35 = arith.truncf %34 : vector<8x128xf32> to vector<8x128xbf16>
    %c0_19 = arith.constant 0 : index
    %c0_20 = arith.constant 0 : index
    %36 = vector.load %arg6[%c0_19, %c0_20] : memref<128x128xbf16, #tpu.memory_space<vmem>>, vector<128x128xbf16>
    %cst_21 = arith.constant dense<0.000000e+00> : vector<8x128xf32>
    %37 = tpu.matmul %35, %36, %cst_21 {dimension_numbers = #tpu.dot_dimension_numbers<[1], [0], [0], [1], [0, 0, 1, 1], [], []>} : vector<8x128xbf16>, vector<128x128xbf16>, vector<8x128xf32> -> vector<8x128xf32>
    %c0_22 = arith.constant 0 : index
    %c0_23 = arith.constant 0 : index
    %38 = vector.load %arg7[%c0_22, %c0_23] : memref<8x128xf32, #tpu.memory_space<vmem>>, vector<8x128xf32>
    tpu.vector_store %arg7[%c0_22, %c0_23], %37 {strides = array<i32>} : memref<8x128xf32, #tpu.memory_space<vmem>>, vector<8x128xf32>,
    return
  }
}

</mosaic_0001>

<bundles_post_ra>
// kernel: tpu_custom_call.1
= control target key start
LH: loop header
LB: loop body
LE: loop exit
PB: predicated region body
PF: predicated region fallthrough
CT: control target
= control target key end

     0   :  { %12 = vsyncpa [#allocation3], 0  ;;  %s641_s0 = inlined_call_operand.hbm [shape: f32[8,16], index: 0, kind: input, shape index: {}]   ;;  %s642_s1 = inlined_call_operand.hbm [shape: bf16[16,128], index: 1, kind: input, shape index: {}]   ;;  %s643_s2 = inlined_call_operand.vmem [shape: f32[1,128], index: 2, kind: input, shape index: {}]   ;;  %s644_s3 = inlined_call_operand.hbm [shape: bf16[128,128], index: 3, kind: input, shape index: {}]   ;;  %s645_s4 = inlined_call_operand.vmem [shape: f32[1,128], index: 4, kind: input, shape index: {}]   ;;  %s646_s5 = inlined_call_operand.vmem [shape: f32[1,128], index: 5, kind: input, shape index: {}]   ;;  %s647_s6 = inlined_call_operand.hbm [shape: bf16[128,128], index: 6, kind: input, shape index: {}]   ;;  %s648_s7 = inlined_call_operand.hbm [shape: f32[8,128], index: 7, kind: output, shape index: {}]  }
   0x1   :  { %13 = vsyncpa [#allocation6], 0 }
   0x2   :  { %14 = vsyncpa [#allocation9], 0  ;;  %s31_s26 = sshll.u32 %s642_s1, 4  ;;  %s32_s26 = int_to_ptr.hbm [resolvable:$true] %s31_s26 }
   0x3   :  { %15 = vsyncpa [#allocation4], 0  ;;  %s569_s27 = smov [#allocation5]   ;;  %s21_s8 = sshll.u32 %s641_s0, 4  ;;  %s22_s8 = int_to_ptr.hbm [resolvable:$true] %s21_s8 }
   0x4   :  { %s33_s28 = sshll.u32 %s569_s27, 4  ;;  %s570_s9 = smov 64   ;;  %s34_s28 = int_to_ptr.vmem [resolvable:$true] %s33_s28 }
   0x5   :  { %s571_s10 = smov 4   ;;  %s572_s11 = smov [#allocation2]  }
   0x6   :  { %39 = dma.hbm_to_vmem [thread:$0]  %s32_s26, 128, %s34_s28, [#allocation6], %s570_s9, %s570_s9, %s571_s10  }
   0x7   :  { %s23_s12 = sshll.u32 %s572_s11, 4  ;;  %s46_s15 = sshll.u32 %s644_s3, 4  ;;  %s24_s12 = int_to_ptr.vmem [resolvable:$true] %s23_s12  ;;  %s47_s15 = int_to_ptr.hbm [resolvable:$true] %s46_s15 }
   0x8   :  { %26 = dma.hbm_to_vmem [thread:$0]  %s22_s8, 128, %s24_s12, [#allocation3]  }
   0x9   :  { %s63_s17 = sshll.u32 %s647_s6, 4  ;;  %s573_s18 = smov [#allocation7]   ;;  %s64_s17 = int_to_ptr.hbm [resolvable:$true] %s63_s17 }
   0xa   :  { %s48_s19 = sshll.u32 %s573_s18, 4  ;;  %s574_s0 = smov [#allocation8]   ;;  %s49_s19 = int_to_ptr.vmem [resolvable:$true] %s48_s19 }
   0xb   :  { %54 = dma.hbm_to_vmem [thread:$0]  %s47_s15, 1024, %s49_s19, [#allocation6], %s570_s9, %s570_s9, %s571_s10  }
   0xc   :  { %s65_s20 = sshll.u32 %s574_s0, 4  ;;  %s66_s20 = int_to_ptr.vmem [resolvable:$true] %s65_s20 }
   0xd   :  { %71 = dma.hbm_to_vmem [thread:$0]  %s64_s17, 1024, %s66_s20, [#allocation9], %s570_s9, %s570_s9, %s571_s10  }
   0xe   :  { %561 = dma.done.wait [#allocation3], 128  }
   0xf   :  { %562 = vsyncadd [#allocation3], 4294967168 }
  0x10   :  { %563 = dma.done.wait [#allocation6], 1152  }
  0x11   :  { %564 = vsyncadd [#allocation6], 4294966144 }
  0x12   :  { %565 = dma.done.wait [#allocation9], 1024  }
  0x13   :  { %566 = vsyncadd [#allocation9], 4294966272  ;;  %v410_v0 = vld [vmem:[#allocation5] sm:$0xff]  ;;  %v89_v1 = vld [vmem:[#allocation2] sm:$0xff]  ;;  %vm103_vm0 = vcmask 130048   ;;  %v575_v17 = vmov 8.0  }
  0x14   :  { %v418_v2 = vld [vmem:[#allocation7 + $0x38] sm:$0xff]  ;;  %v90_v3 = vpack.c.bf16 %v89_v1, %v89_v1  ;;  %114 = vmatpush.bf16.msra.mxu0 %v410_v0  ;;  %v417_v4 = vld [vmem:[#allocation7 + $0x30] sm:$0xff]  ;;  %v416_v5 = vld [vmem:[#allocation7 + $0x28] sm:$0xff]  ;;  %437 = vrcp.f32 %v575_v17  ;;  %s576_s24 = smov [#allocation10]   ;;  %s329_s28 = sshll.u32 %s648_s7, 4  ;;  %s330_s28 = int_to_ptr.hbm [resolvable:$true] %s329_s28 }
  0x15   :  { %186 = vmatpush.bf16.msra.mxu1 %v418_v2  ;;  %v415_v6 = vld [vmem:[#allocation7 + $0x20] sm:$0xff]  ;;  %v414_v7 = vld [vmem:[#allocation7 + $0x18] sm:$0xff]  ;;  %v413_v8 = vld [vmem:[#allocation7 + $0x10] sm:$0xff]  ;;  %s327_s25 = sshll.u32 %s576_s24, 4  ;;  %s328_s25 = int_to_ptr.vmem [resolvable:$true] %s327_s25 }
  0x16   :  { %v412_v9 = vld [vmem:[#allocation7 + $0x8] sm:$0xff]  ;;  %v411_v10 = vld [vmem:[#allocation7] sm:$0xff]  ;;  %v435_v11 = vld [vmem:[%s643_s2] ss:$0 sm:$0xff] }
  0x17   :  { %345 = vmatmul.msk.bf16.vlgmr.msra.gmra.mxu0 %vm103_vm0, %v90_v3  ;;  %v426_v22 = vld [vmem:[#allocation8 + $0x38] sm:$0xff]  ;;  %v425_v26 = vld [vmem:[#allocation8 + $0x30] sm:$0xff]  ;;  %v424_v31 = vld [vmem:[#allocation8 + $0x28] sm:$0xff] }
  0x18   :  { %308 = vmatpush.bf16.msra.mxu2 %v426_v22  ;;  %v423_v35 = vld [vmem:[#allocation8 + $0x20] sm:$0xff]  ;;  %v422_v37 = vld [vmem:[#allocation8 + $0x18] sm:$0xff]  ;;  %v421_v40 = vld [vmem:[#allocation8 + $0x10] sm:$0xff] }
  0x19   :  { %187 = vmatpush.bf16.msra.mxu1 %v417_v4  ;;  %v420_v43 = vld [vmem:[#allocation8 + $0x8] sm:$0xff]  ;;  %v419_v46 = vld [vmem:[#allocation8] sm:$0xff]  ;;  %v233_v57 = vld [vmem:[%s645_s4] sm:$0x1] }
  0x1a   :  { %v438_v18 = vpop.eup %437  ;;  %v436_v61 = vld [vmem:[%s646_s5] ss:$0 sm:$0xff] }
  0x1b   :  { %v206_v19 = vmul.f32 8.0, %v438_v18  ;;  %vm210_vm1 = vweird.f32 %v438_v18 }
  0x1c   :  { %309 = vmatpush.bf16.msra.mxu2 %v425_v26 }
  0x1d   :  { %188 = vmatpush.bf16.msra.mxu1 %v416_v5  ;;  %v207_v20 = vsub.f32 1.0, %v206_v19 }
  0x1f   :  { %v208_v24 = vmul.f32 %v438_v18, %v207_v20 }
  0x20   :  { %310 = vmatpush.bf16.msra.mxu2 %v424_v31 }
  0x21   :  { %189 = vmatpush.bf16.msra.mxu1 %v415_v6  ;;  %v209_v28 = vadd.f32 %v438_v18, %v208_v24 }
  0x23   :  { %v211_v33 = vsel %vm210_vm1, %v438_v18, %v209_v28 }
  0x24   :  { %311 = vmatpush.bf16.msra.mxu2 %v423_v35 }
  0x25   :  { %190 = vmatpush.bf16.msra.mxu1 %v414_v7 }
  0x28   :  { %312 = vmatpush.bf16.msra.mxu2 %v422_v37 }
  0x29   :  { %191 = vmatpush.bf16.msra.mxu1 %v413_v8 }
  0x2c   :  { %313 = vmatpush.bf16.msra.mxu2 %v421_v40 }
  0x2d   :  { %192 = vmatpush.bf16.msra.mxu1 %v412_v9 }
  0x30   :  { %314 = vmatpush.bf16.msra.mxu2 %v420_v43 }
  0x31   :  { %193 = vmatpush.bf16.msra.mxu1 %v411_v10 }
  0x34   :  { %315 = vmatpush.bf16.msra.mxu2 %v419_v46 }
  0x94   :  { %v116_v12 = vpop.f32.mrf.mxu0 }
  0x95   :  { %v117_v13 = vadd.f32 %v435_v11, %v116_v12 }
  0x97   :  { %v120_v14 = vmax.f32 %v117_v13, 0.0 }
  0x99   :  { %v121_v15 = vpack.c.bf16 %v120_v14, %v120_v14 }
  0x9b   :  { %194 = vmatmul.bf16.vlgmr.msra.gmra.mxu1 %v121_v15 }
  0x9c   :  { %v118_v16 = vpop.f32.mrf.mxu0 }
 0x118   :  { %v195_v21 = vpop.f32.mrf.mxu1 }
 0x119   :  { %v199_v23 = vrot.slane %v195_v21, 4 }
 0x11b   :  { %v200_v25 = vadd.f32 %v199_v23, %v195_v21 }
 0x11d   :  { %v201_v27 = vrot.slane %v200_v25, 2 }
 0x11f   :  { %v202_v29 = vadd.f32 %v201_v27, %v200_v25 }
 0x120   :  { %v197_v30 = vpop.f32.mrf.mxu1 }
 0x121   :  { %v203_v32 = vrot.slane %v202_v29, 1 }
 0x123   :  { %v204_v34 = vadd.f32 %v203_v32, %v202_v29 }
 0x125   :  { %v212_v36 = vmul.f32 %v211_v33, %v204_v34 }
 0x127   :  { %v213_v38 = vsub.f32 %v195_v21, %v212_v36 }
 0x129   :  { %v214_v39 = vmul.f32 %v213_v38, %v213_v38 }
 0x12b   :  { %v215_v41 = vrot.slane %v214_v39, 4 }
 0x12d   :  { %v216_v42 = vadd.f32 %v215_v41, %v214_v39 }
 0x12f   :  { %v217_v44 = vrot.slane %v216_v42, 2 }
 0x131   :  { %v218_v45 = vadd.f32 %v217_v44, %v216_v42 }
 0x133   :  { %v219_v47 = vrot.slane %v218_v45, 1 }
 0x135   :  { %v220_v48 = vadd.f32 %v219_v47, %v218_v45 }
 0x137   :  { %v221_v49 = vmul.f32 %v220_v48, %v211_v33 }
 0x139   :  { %v222_v50 = vadd.f32 1e-05, %v221_v49 }
 0x13b   :  { %439 = vrsqrt.f32 %v222_v50  ;;  %vm229_vm3 = vweird.f32 %v222_v50 }
 0x141   :  { %v440_v51 = vpop.eup %439 }
 0x142   :  { %v224_v52 = vmul.f32 %v440_v51, %v222_v50  ;;  %vm230_vm2 = vweird.f32 %v440_v51 }
 0x143   :  { %vm231_vm4 = vmor %vm229_vm3, %vm230_vm2 }
 0x144   :  { %v225_v53 = vmul.f32 %v440_v51, %v224_v52 }
 0x146   :  { %v226_v54 = vmul.f32 0.5, %v225_v53 }
 0x148   :  { %v227_v55 = vsub.f32 1.5, %v226_v54 }
 0x14a   :  { %v228_v56 = vmul.f32 %v440_v51, %v227_v55 }
 0x14c   :  { %v232_v58 = vsel %vm231_vm4, %v440_v51, %v228_v56 }
 0x14d   :  { %v234_v59 = vmul.f32 %v233_v57, %v232_v58 }
 0x14f   :  { %v235_v60 = vperm.slane %v234_v59, 0 }
 0x151   :  { %v236_v62 = vmul.f32 %v235_v60, %v213_v38 }
 0x153   :  { %v241_v63 = vadd.f32 %v436_v61, %v236_v62 }
 0x155   :  { %v242_v0 = vmax.f32 %v241_v63, 0.0 }
 0x157   :  { %v243_v1 = vpack.c.bf16 %v242_v0, %v242_v0 }
 0x159   :  { %316 = vmatmul.bf16.vlgmr.msra.gmra.mxu2 %v243_v1 }
 0x1dc   :  { %v317_v2 = vpop.f32.mrf.mxu2 }
 0x1dd   :  { %321 = vst [vmem:[#allocation10] sm:$0xff] %v317_v2 }
 0x1de   :  { %332 = dma.vmem_to_hbm [thread:$0]  %s328_s25, 128, %s330_s28, [#allocation4]  }
 0x1e4   :  { %v319_v3 = vpop.f32.mrf.mxu2 }
 0x1e5   :  { %567 = dma.done.wait [#allocation4], 128  }
 0x1e6   :  { %568 = vsyncadd [#allocation4], 4294967168 }
 0x1e7   :  { %337 = vsyncpa [#allocation3], 1 }
 0x1e8   :  { %338 = vsyncpa [#allocation6], 1 }
 0x1e9   :  { %339 = vsyncpa [#allocation9], 1 }
 0x1ea   :  { %340 = vsyncpa [#allocation4], 1 }

</bundles_post_ra>
